<compile_context>
chip_gen: v6e
topology: v6e:2x2x1
jax: 0.10.0
libtpu: 0.0.40
codegen_flags: <defaults>
</compile_context>

<pallas_src>
import jax
import jax.numpy as jnp
from jax.scipy.linalg import block_diag
from jax.experimental import pallas as pl
from jax.experimental.pallas import tpu as pltpu


# --------------------------------------------------------------------------
# small helpers
# --------------------------------------------------------------------------
def _round_up(a, b):
    return (a + b - 1) // b * b


def _cdiv(a, b):
    return (a + b - 1) // b


_SQRT1_2 = 0.7071067811865476


def _erf(x):
    # Abramowitz & Stegun 7.1.26 rational approximation, |err| <= 1.5e-7.
    # Uses abs/exp/mul/add/where + pl.reciprocal, all guaranteed to lower on
    # Mosaic; reciprocal goes to the EUP slot and keeps VALU slots free.
    p = 0.3275911
    a1, a2, a3, a4, a5 = 0.254829592, -0.284496736, 1.421413741, -1.453152027, 1.061405429
    ax = jnp.abs(x)
    t = pl.reciprocal(1.0 + p * ax, approx=False)
    poly = t * (a1 + t * (a2 + t * (a3 + t * (a4 + t * a5))))
    y = 1.0 - poly * jnp.exp(-ax * ax)
    return jnp.where(x < 0.0, -y, y)


def _gelu(x):
    # exact (erf-based) GELU, matching torch.nn.GELU() default; f32 math.
    return 0.5 * x * (1.0 + _erf(x * _SQRT1_2))


# --------------------------------------------------------------------------
# the fused Monarch-MLP kernel: one M-tile per grid step, two dense matmuls
# --------------------------------------------------------------------------
def _monarch_mlp_kernel(x_ref, w1_ref, b1_ref, w2_ref, b2_ref, o_ref):
    x = x_ref[...]                                           # (TM, IN)
    h = jax.lax.dot_general(x, w1_ref[...],
                            dimension_numbers=(((1,), (0,)), ((), ())),
                            preferred_element_type=jnp.float32)
    h = _gelu(h + b1_ref[...].astype(jnp.float32))           # full-width bias+GELU, f32
    h = h.astype(w2_ref.dtype)                               # bf16-friendly MXU input
    y = jax.lax.dot_general(h, w2_ref[...],
                            dimension_numbers=(((1,), (0,)), ((), ())),
                            preferred_element_type=jnp.float32)
    y = y + b2_ref[...].astype(jnp.float32)
    o_ref[...] = y.astype(o_ref.dtype)                       # single lane-dense store


# --------------------------------------------------------------------------
# wrapper-side (tiny, weight-only) preprocessing
# --------------------------------------------------------------------------
def _monarch_dense_weight(w1, w2, in_width, out_width):
    """Collapse one MonarchLinear's matmul (pad -> blkdiag1 -> butterfly ->
    blkdiag2 -> interleave -> truncate) into a dense (in_width, out_width)
    matrix by pushing an identity through the reference Monarch map."""
    k, q, p = w1.shape
    l, s, r = w2.shape
    assert k * q == l * r
    n_ext = k * p
    assert in_width <= n_ext and out_width <= s * l
    hi = jax.lax.Precision.HIGHEST
    eye = jnp.eye(in_width, n_ext, dtype=jnp.float32)        # rows = unpadded inputs
    o1 = jnp.einsum("kqp,bkp->bkq", w1.astype(jnp.float32),
                    eye.reshape(in_width, k, p), precision=hi)
    o1 = o1.reshape(in_width, r, l).transpose(0, 2, 1)       # butterfly permutation
    o2 = jnp.einsum("lsr,blr->bls", w2.astype(jnp.float32), o1, precision=hi)
    return o2.transpose(0, 2, 1).reshape(in_width, s * l)[:, :out_width]


# --------------------------------------------------------------------------
# public wrapper
# --------------------------------------------------------------------------
def monarch_mlp(x, params, hidden_features, out_features, *, tile_m=2048):
    """Fused MonarchMlp forward.  params: fc{1,2}_blkdiag{1,2}, fc{1,2}_bias."""
    *batch, in_features = x.shape
    w1a, w1b = params["fc1_blkdiag1"], params["fc1_blkdiag2"]
    w2a, w2b = params["fc2_blkdiag1"], params["fc2_blkdiag2"]
    b1, b2 = params.get("fc1_bias"), params.get("fc2_bias")

    k1, _, p1 = w1a.shape
    l1, s1, _ = w1b.shape
    k2, _, p2 = w2a.shape
    assert in_features <= k1 * p1
    assert hidden_features <= l1 * s1 and hidden_features <= k2 * p2

    dtype = x.dtype
    dsize = jnp.dtype(dtype).itemsize

    # ---- dense effective weights (tiny, built once in f32) -------------------
    # fc1's truncation to hidden_features and fc2's re-padding are folded in by
    # keeping exactly hidden_features hidden columns / rows (padded slots of
    # fc2's input receive zeros, so dropping those rows is exact).
    W1 = _monarch_dense_weight(w1a, w1b, in_features, hidden_features)
    W2 = _monarch_dense_weight(w2a, w2b, hidden_features, out_features)
    b1v = jnp.zeros((hidden_features,), jnp.float32) if b1 is None else b1.astype(jnp.float32)
    b2v = jnp.zeros((out_features,), jnp.float32) if b2 is None else b2.astype(jnp.float32)

    # ---- narrow-feature token packing: P tokens per 128-lane row -------------
    P = 1
    narrow = min(in_features, out_features)
    while (narrow * P * 2 <= 128
           and P * P * (in_features * hidden_features
                        + hidden_features * out_features) * 4 <= (4 << 20)):
        P *= 2
    if P > 1:
        W1 = block_diag(*([W1] * P))
        W2 = block_diag(*([W2] * P))
        b1v = jnp.tile(b1v, P)
        b2v = jnp.tile(b2v, P)
    in_w, hid_w, out_w = P * in_features, P * hidden_features, P * out_features
    W1 = W1.astype(dtype)
    W2 = W2.astype(dtype)
    b1v = b1v.reshape(1, hid_w).astype(dtype)
    b2v = b2v.reshape(1, out_w).astype(dtype)

    # ---- token tiling ---------------------------------------------------------
    xf = x.reshape(-1, in_features)
    M = xf.shape[0]
    sub = max(8, 32 // dsize)                      # dtype-native sublane multiple
    rows = _cdiv(M, P)                             # packed rows needed
    tm = _round_up(min(tile_m, _round_up(rows, sub)), sub)
    if tm >= rows and rows >= 2 * sub:
        tm = _round_up(_cdiv(rows, 2), sub)        # grid >= 2 so v7x megacore shards M
    # keep double-buffered IO tiles + resident weights + f32 intermediates in VMEM
    per_row = 2 * (in_w + out_w) * dsize + 2 * hid_w * 4
    fixed = (in_w * hid_w + hid_w * out_w + hid_w + out_w) * dsize * 2
    while tm > sub and tm * per_row + fixed > (32 << 20):
        tm = _round_up(tm // 2, sub)
    rows_p = _round_up(rows, tm)
    Mp = rows_p * P
    if Mp > M:
        xf = jnp.pad(xf, ((0, Mp - M), (0, 0)))
    xp = xf.reshape(rows_p, in_w)                  # contiguous pack (free reshape)

    grid = (rows_p // tm,)
    cost = pl.CostEstimate(
        flops=2 * rows_p * (in_w * hid_w + hid_w * out_w),
        transcendentals=rows_p * hid_w,
        bytes_accessed=(rows_p * (in_w + out_w)
                        + in_w * hid_w + hid_w * out_w + hid_w + out_w) * dsize)

    out_packed = pl.pallas_call(
        _monarch_mlp_kernel,
        out_shape=jax.ShapeDtypeStruct((rows_p, out_w), dtype),
        grid=grid,
        in_specs=[
            pl.BlockSpec((tm, in_w), lambda m: (m, 0)),       # x tile
            pl.BlockSpec((in_w, hid_w), lambda m: (0, 0)),    # W1 (resident)
            pl.BlockSpec((1, hid_w), lambda m: (0, 0)),       # b1 (resident)
            pl.BlockSpec((hid_w, out_w), lambda m: (0, 0)),   # W2 (resident)
            pl.BlockSpec((1, out_w), lambda m: (0, 0)),       # b2 (resident)
        ],
        out_specs=pl.BlockSpec((tm, out_w), lambda m: (m, 0)),
        compiler_params=pltpu.CompilerParams(
            dimension_semantics=("parallel",),
            vmem_limit_bytes=48 << 20),            # headroom under v7x's 64 MiB VMEM
        cost_estimate=cost,
    )(xp, W1, b1v, W2, b2v)

    # contiguous un-pack (free reshape), drop padded rows
    y = out_packed.reshape(Mp, out_features)[:M]
    return y.reshape(*batch, out_features)


# --------------------------------------------------------------------------
# pure-JAX reference (faithful to the PyTorch module) for the self-check
# --------------------------------------------------------------------------
def _monarch_linear_ref(x, w1, w2, bias, out_features):
    *bs, n = x.shape
    k, q, p = w1.shape
    l, s, r = w2.shape
    xf = x.reshape(-1, n)
    if n < k * p:
        xf = jnp.pad(xf, ((0, 0), (0, k * p - n)))
    M = xf.shape[0]
    hi = jax.lax.Precision.HIGHEST
    o1 = jnp.einsum("kqp,bkp->bkq", w1, xf.reshape(M, k, p), precision=hi)
    o1 = o1.reshape(M, r, l).transpose(0, 2, 1)                 # butterfly permutation
    o2 = jnp.einsum("lsr,blr->bls", w2, o1, precision=hi)
    out = o2.transpose(0, 2, 1).reshape(M, s * l)[:, :out_features]
    if bias is not None:
        out = out + bias
    return out.reshape(*bs, out_features)


def _monarch_mlp_ref(x, params, hidden_features, out_features):
    h = _monarch_linear_ref(x, params["fc1_blkdiag1"], params["fc1_blkdiag2"],
                            params.get("fc1_bias"), hidden_features)
    h = jax.nn.gelu(h, approximate=False)                       # nn.GELU() (exact)
    # nn.Dropout(p=0.0) -> identity
    return _monarch_linear_ref(h, params["fc2_blkdiag1"], params["fc2_blkdiag2"],
                               params.get("fc2_bias"), out_features)


if __name__ == "__main__":
    B, N = 2, 64
    in_features, hidden_features = 32, 64
    out_features = in_features
    nblocks = 4
    in_blk1, out_blk1 = in_features // nblocks, hidden_features // nblocks    # 8, 16
    in_blk2, out_blk2 = hidden_features // nblocks, out_features // nblocks   # 16, 8

    key = jax.random.PRNGKey(0)
    ks = jax.random.split(key, 7)
    scale = 0.15
    params = {
        # fc1: in_ext(32) < out_ext(64) -> blkdiag1 (k, in_blk, in_blk), blkdiag2 (k, out_blk, in_blk)
        "fc1_blkdiag1": scale * jax.random.normal(ks[0], (nblocks, in_blk1, in_blk1), jnp.float32),
        "fc1_blkdiag2": scale * jax.random.normal(ks[1], (nblocks, out_blk1, in_blk1), jnp.float32),
        "fc1_bias": 0.05 * jax.random.normal(ks[2], (hidden_features,), jnp.float32),
        # fc2: in_ext(64) >= out_ext(32) -> blkdiag1 (k, out_blk, in_blk), blkdiag2 (k, out_blk, out_blk)
        "fc2_blkdiag1": scale * jax.random.normal(ks[3], (nblocks, out_blk2, in_blk2), jnp.float32),
        "fc2_blkdiag2": scale * jax.random.normal(ks[4], (nblocks, out_blk2, out_blk2), jnp.float32),
        "fc2_bias": 0.05 * jax.random.normal(ks[5], (out_features,), jnp.float32),
    }
    x = jax.random.normal(ks[6], (B, N, in_features), jnp.float32)

    out = monarch_mlp(x, params, hidden_features, out_features)
    out = jax.block_until_ready(out)

    ref = _monarch_mlp_ref(x, params, hidden_features, out_features)
    assert out.shape == (B, N, out_features)
    max_err = float(jnp.max(jnp.abs(out - ref)))
    assert jnp.allclose(out, ref, atol=5e-4, rtol=5e-4), max_err
    print("KERNEL_OK")
</pallas_src>

<mosaic_0001>
module attributes {stable_mosaic.version = 11 : i64} {
  func.func @_monarch_mlp_kernel(%arg0: i32, %arg1: memref<16x128xf32, #tpu.memory_space<vmem>>, %arg2: memref<128x256xf32, #tpu.memory_space<vmem>>, %arg3: memref<1x256xf32, #tpu.memory_space<vmem>>, %arg4: memref<256x128xf32, #tpu.memory_space<vmem>>, %arg5: memref<1x128xf32, #tpu.memory_space<vmem>>, %arg6: memref<16x128xf32, #tpu.memory_space<vmem>>) attributes {dimension_semantics = [#tpu.dimension_semantics<parallel>], iteration_bounds = array<i64: 2>, scalar_prefetch = 0 : i64, scratch_operands = 0 : i64, tpu.core_type = #tpu.core_type<tc>, window_params = [{transform_indices = @transform_0, window_bounds = array<i64: 16, 128>}, {pipeline_mode = #tpu.pipeline_mode<synchronous>, transform_indices = @transform_1, window_bounds = array<i64: 128, 256>}, {pipeline_mode = #tpu.pipeline_mode<synchronous>, transform_indices = @transform_2, window_bounds = array<i64: 1, 256>}, {pipeline_mode = #tpu.pipeline_mode<synchronous>, transform_indices = @transform_3, window_bounds = array<i64: 256, 128>}, {pipeline_mode = #tpu.pipeline_mode<synchronous>, transform_indices = @transform_4, window_bounds = array<i64: 1, 128>}, {transform_indices = @transform_5, window_bounds = array<i64: 16, 128>}]} {
    %c0 = arith.constant 0 : index
    %c0_0 = arith.constant 0 : index
    %0 = vector.load %arg1[%c0, %c0_0] : memref<16x128xf32, #tpu.memory_space<vmem>>, vector<16x128xf32>
    %c0_1 = arith.constant 0 : index
    %c0_2 = arith.constant 0 : index
    %1 = vector.load %arg2[%c0_1, %c0_2] : memref<128x256xf32, #tpu.memory_space<vmem>>, vector<128x256xf32>
    %cst = arith.constant dense<0.000000e+00> : vector<16x256xf32>
    %2 = tpu.matmul %0, %1, %cst {dimension_numbers = #tpu.dot_dimension_numbers<[1], [0], [0], [1], [0, 0, 1, 1], [], []>} : vector<16x128xf32>, vector<128x256xf32>, vector<16x256xf32> -> vector<16x256xf32>
    %c0_3 = arith.constant 0 : index
    %c0_4 = arith.constant 0 : index
    %3 = vector.load %arg3[%c0_3, %c0_4] : memref<1x256xf32, #tpu.memory_space<vmem>>, vector<1x256xf32>
    %4 = vector.broadcast %3 : vector<1x256xf32> to vector<16x256xf32>
    %5 = arith.addf %2, %4 : vector<16x256xf32>
    %cst_5 = arith.constant 5.000000e-01 : f32
    %6 = vector.broadcast %cst_5 : f32 to vector<16x256xf32>
    %7 = arith.mulf %6, %5 : vector<16x256xf32>
    %cst_6 = arith.constant 0.707106769 : f32
    %8 = vector.broadcast %cst_6 : f32 to vector<16x256xf32>
    %9 = arith.mulf %5, %8 : vector<16x256xf32>
    %10 = math.absf %9 : vector<16x256xf32>
    %cst_7 = arith.constant 0.327591091 : f32
    %11 = vector.broadcast %cst_7 : f32 to vector<16x256xf32>
    %12 = arith.mulf %11, %10 : vector<16x256xf32>
    %cst_8 = arith.constant 1.000000e+00 : f32
    %13 = vector.broadcast %cst_8 : f32 to vector<16x256xf32>
    %14 = arith.addf %13, %12 : vector<16x256xf32>
    %15 = tpu.reciprocal %14 : vector<16x256xf32> -> vector<16x256xf32>
    %cst_9 = arith.constant 1.06140542 : f32
    %16 = vector.broadcast %cst_9 : f32 to vector<16x256xf32>
    %17 = arith.mulf %15, %16 : vector<16x256xf32>
    %cst_10 = arith.constant -1.45315206 : f32
    %18 = vector.broadcast %cst_10 : f32 to vector<16x256xf32>
    %19 = arith.addf %18, %17 : vector<16x256xf32>
    %20 = arith.mulf %15, %19 : vector<16x256xf32>
    %cst_11 = arith.constant 1.42141378 : f32
    %21 = vector.broadcast %cst_11 : f32 to vector<16x256xf32>
    %22 = arith.addf %21, %20 : vector<16x256xf32>
    %23 = arith.mulf %15, %22 : vector<16x256xf32>
    %cst_12 = arith.constant -0.284496725 : f32
    %24 = vector.broadcast %cst_12 : f32 to vector<16x256xf32>
    %25 = arith.addf %24, %23 : vector<16x256xf32>
    %26 = arith.mulf %15, %25 : vector<16x256xf32>
    %cst_13 = arith.constant 0.254829586 : f32
    %27 = vector.broadcast %cst_13 : f32 to vector<16x256xf32>
    %28 = arith.addf %27, %26 : vector<16x256xf32>
    %29 = arith.mulf %15, %28 : vector<16x256xf32>
    %cst_14 = arith.constant 0.000000e+00 : f32
    %30 = vector.broadcast %cst_14 : f32 to vector<16x256xf32>
    %31 = arith.subf %30, %10 : vector<16x256xf32>
    %32 = arith.mulf %31, %10 : vector<16x256xf32>
    %33 = math.exp %32 : vector<16x256xf32>
    %34 = arith.mulf %29, %33 : vector<16x256xf32>
    %cst_15 = arith.constant 1.000000e+00 : f32
    %35 = vector.broadcast %cst_15 : f32 to vector<16x256xf32>
    %36 = arith.subf %35, %34 : vector<16x256xf32>
    %cst_16 = arith.constant 0.000000e+00 : f32
    %37 = vector.broadcast %cst_16 : f32 to vector<16x256xf32>
    %38 = arith.cmpf olt, %9, %37 : vector<16x256xf32>
    %cst_17 = arith.constant 0.000000e+00 : f32
    %39 = vector.broadcast %cst_17 : f32 to vector<16x256xf32>
    %40 = arith.subf %39, %36 : vector<16x256xf32>
    %41 = arith.select %38, %40, %36 : vector<16x256xi1>, vector<16x256xf32>
    %cst_18 = arith.constant 1.000000e+00 : f32
    %42 = vector.broadcast %cst_18 : f32 to vector<16x256xf32>
    %43 = arith.addf %42, %41 : vector<16x256xf32>
    %44 = arith.mulf %7, %43 : vector<16x256xf32>
    %c0_19 = arith.constant 0 : index
    %c0_20 = arith.constant 0 : index
    %45 = vector.load %arg4[%c0_19, %c0_20] : memref<256x128xf32, #tpu.memory_space<vmem>>, vector<256x128xf32>
    %cst_21 = arith.constant dense<0.000000e+00> : vector<16x128xf32>
    %46 = tpu.matmul %44, %45, %cst_21 {dimension_numbers = #tpu.dot_dimension_numbers<[1], [0], [0], [1], [0, 0, 1, 1], [], []>} : vector<16x256xf32>, vector<256x128xf32>, vector<16x128xf32> -> vector<16x128xf32>
    %c0_22 = arith.constant 0 : index
    %c0_23 = arith.constant 0 : index
    %47 = vector.load %arg5[%c0_22, %c0_23] : memref<1x128xf32, #tpu.memory_space<vmem>>, vector<1x128xf32>
    %48 = vector.broadcast %47 : vector<1x128xf32> to vector<16x128xf32>
    %49 = arith.addf %46, %48 : vector<16x128xf32>
    %c0_24 = arith.constant 0 : index
    %c0_25 = arith.constant 0 : index
    %50 = vector.load %arg6[%c0_24, %c0_25] : memref<16x128xf32, #tpu.memory_space<vmem>>, vector<16x128xf32>
    tpu.vector_store %arg6[%c0_24, %c0_25], %49 {strides = array<i32>} : memref<16x128xf32, #tpu.memory_space<vmem>>, vector<16x128xf32>,
    return
  }
  func.func @transform_0(%arg0: i32) -> (i32, i32) {
    %c0_i32 = arith.constant 0 : i32
    %c0_i32_0 = arith.constant 0 : i32
    return %arg0, %c0_i32 : i32, i32
  }
  func.func @transform_1(%arg0: i32) -> (i32, i32) {
    %c0_i32 = arith.constant 0 : i32
    %c0_i32_0 = arith.constant 0 : i32
    %c0_i32_1 = arith.constant 0 : i32
    return %c0_i32, %c0_i32_0 : i32, i32
  }
  func.func @transform_2(%arg0: i32) -> (i32, i32) {
    %c0_i32 = arith.constant 0 : i32
    %c0_i32_0 = arith.constant 0 : i32
    %c0_i32_1 = arith.constant 0 : i32
    return %c0_i32, %c0_i32_0 : i32, i32
  }
  func.func @transform_3(%arg0: i32) -> (i32, i32) {
    %c0_i32 = arith.constant 0 : i32
    %c0_i32_0 = arith.constant 0 : i32
    %c0_i32_1 = arith.constant 0 : i32
    return %c0_i32, %c0_i32_0 : i32, i32
  }
  func.func @transform_4(%arg0: i32) -> (i32, i32) {
    %c0_i32 = arith.constant 0 : i32
    %c0_i32_0 = arith.constant 0 : i32
    %c0_i32_1 = arith.constant 0 : i32
    return %c0_i32, %c0_i32_0 : i32, i32
  }
  func.func @transform_5(%arg0: i32) -> (i32, i32) {
    %c0_i32 = arith.constant 0 : i32
    %c0_i32_0 = arith.constant 0 : i32
    return %arg0, %c0_i32 : i32, i32
  }
}

</mosaic_0001>

<bundles_post_ra>
// kernel: tpu_custom_call.1
= control target key start
LH: loop header
LB: loop body
LE: loop exit
PB: predicated region body
PF: predicated region fallthrough
CT: control target
= control target key end

     0   :  { %10 = vsyncpa [#allocation3], 0  ;;  %s1305_s0 = inlined_call_operand.hbm [shape: f32[32,128], index: 0, kind: input, shape index: {}]   ;;  %s1306_s1 = inlined_call_operand.hbm [shape: f32[128,256], index: 1, kind: input, shape index: {}]   ;;  %s1307_s2 = inlined_call_operand.vmem [shape: f32[1,256], index: 2, kind: input, shape index: {}]   ;;  %s1308_s3 = inlined_call_operand.hbm [shape: f32[256,128], index: 3, kind: input, shape index: {}]   ;;  %s1309_s4 = inlined_call_operand.vmem [shape: f32[1,128], index: 4, kind: input, shape index: {}]   ;;  %s1310_s5 = inlined_call_operand.hbm [shape: f32[32,128], index: 5, kind: output, shape index: {}]  }
   0x1   :  { %12 = vsyncpa [#allocation3 + $0x1], 0 }
   0x2   :  { %13 = vsyncpa [#allocation6], 0 }
   0x3   :  { %14 = vsyncpa [#allocation4], 0 }
   0x4   :  { %16 = vsyncpa [#allocation4 + $0x1], 0  ;;  %s1063_s18 = smov 0   ;;  %s1065_s19 = smov 0  }
   0x5   :  { %s1067_s20 = smov 0   ;;  %s1069_s21 = smov 0  }
   0x6 LB: > { %s1084_s22 = sadd.s32 4294967295, %s1020_s21   ;;  %s723_s23 = sadd.s32 4294967294, %s1020_s21   ;;  %s1020_s21 = sphi %s1069_s21, %s1334_s21   ;;  %s1016_s20 = sphi %s1067_s20, %s1333_s20   ;;  %s1012_s19 = sphi %s1065_s19, %s1332_s19   ;;  %s1008_s18 = sphi %s1063_s18, %s1331_s18  }
   0x7   : > { %p42_p0 = scmp.ne.s32.totalorder %s1012_s19, %s1008_s18  ;;  %p1311_p1 = scmp.eq.s32.totalorder %s1084_s22, 0 }
   0x8   : > { %p156_p3 = scmp.eq.s32.totalorder %s723_s23, 1  ;;  %p724_p5 = scmp.ge.s32.totalorder %s1020_s21, 1 }
   0x9   : > { %p1093_p4 = por %p1311_p1, %p42_p0  ;;  %p163_p7 = scmp.lt.s32.totalorder %s1020_s21, 3 }
   0xa   : > { %p1098_p6 = por %p156_p3, %p42_p0  ;;  %s1022_s27 = smov [#allocation5]  }
   0xb   : > { %s1316_s24 = scalar_select %p1093_p4, 1, 0 }
   0xc   : > { %s1317_s25 = scalar_select %p1098_p6, 1, 0 }
   0xd   : > { %p1103_p8 = pnand %p724_p5, %p163_p7  ;;  %s175_s28 = sshll.u32 %s1022_s27, 4  ;;  %s176_s28 = int_to_ptr.vmem [resolvable:$true] %s175_s28 }
   0xe   : > { %s1023_s30 = smov [#allocation7]   ;;  %s883_s7 = scalar_lea.vmem %s176_s28, 4096 }
   0xf   : > { %s1318_s26 = scalar_select %p1103_p8, 1, 0 }
  0x10   : > { %p794_p9 = pneg %p1103_p8  ;;  %s191_s6 = sshll.u32 %s1023_s30, 4  ;;  %s192_s6 = int_to_ptr.vmem [resolvable:$true] %s191_s6 }
  0x11   : > { %p884_p13 = scmp.ne.s32.totalorder %s176_s28, %s883_s7  ;;  %p891_p5 = scmp.lt.s32.totalorder %s176_s28, %s176_s28 }
  0x12   : > { %p1112_p11 = pnand %p794_p9, %p1311_p1  ;;  %p892_p7 = scmp.lt.s32.totalorder %s883_s7, %s883_s7 }
  0x14   : > { %p874_p12 = pneg %p1112_p11  ;;  %p893_p10 = por %p892_p7, %p891_p5 }
  0x16   : > { %p886_p0 = pnand %p884_p13, %p874_p12 }
  0x18   : > { %p887_p3 = pneg %p886_p0 }
  0x1a   : > { %p894_p9 = pnand %p893_p10, %p887_p3 }
  0x1c   : > { %897 = shalt.err (!%p894_p9)
}
  0x1d   : > { %s1024_s8 = smov 256   ;;  %s1025_s9 = smov 16  }
  0x1e   : > { %797 = dma.hbm_to_vmem [thread:$0]  (!%p1112_p11), %s1306_s1, 4096, %s176_s28, [#allocation6], %s1024_s8, %s1024_s8, %s1025_s9  }
  0x1f   : > { %s909_s12 = scalar_lea.vmem %s192_s6, 4096  ;;  %p917_p2 = scmp.lt.s32.totalorder %s192_s6, %s192_s6 }
  0x20   : > { %p910_p1 = scmp.ne.s32.totalorder %s192_s6, %s909_s12  ;;  %p918_p6 = scmp.lt.s32.totalorder %s909_s12, %s909_s12 }
  0x22   : > { %p912_p13 = pnand %p910_p1, %p874_p12  ;;  %p919_p5 = por %p918_p6, %p917_p2 }
  0x24   : > { %p913_p0 = pneg %p912_p13 }
  0x26   : > { %p920_p10 = pnand %p919_p5, %p913_p0 }
  0x28   : > { %923 = shalt.err (!%p920_p10)
}
  0x29   : > { %s1312_s13 = smov 128   ;;  %s1027_s14 = smov 8  }
  0x2a   : > { %800 = dma.hbm_to_vmem [thread:$0]  (!%p1112_p11), %s1308_s3, 4096, %s192_s6, [#allocation6], %s1312_s13, %s1312_s13, %s1027_s14  }
  0x2b   : > { %s1138_s17 = sadd.s32 1, %s1020_s21   ;;  %s29_s27 = sadd.s32 1, %s1016_s20 }
  0x2c   : > { %s26_s23 = ssub.s32 %s1020_s21, %s1138_s17  ;;  %p36_p2 = scmp.ne.s32.totalorder %s1016_s20, %s1012_s19 }
  0x2d   : > { %p27_p1 = scmp.eq.s32.totalorder %s26_s23, 0  ;;  %p37_p6 = scmp.eq.s32.totalorder %s1020_s21, 0 }
  0x2e   : > { %p1320_p3 = scmp.eq.s32.totalorder %s1084_s22, 1  ;;  %p811_p9 = scmp.lt.s32.totalorder %s1020_s21, 2 }
  0x2f   : > { %s1147_s28 = scalar_select %p27_p1, %s1016_s20, %s29_s27  }
  0x30   : > { %p38_p12 = por %p37_p6, %p36_p2  ;;  %p1151_p7 = por %p1320_p3, %p36_p2 }
  0x31   : > { %s208_s30 = sand.u32 1, %s1016_s20   ;;  %s742_s6 = sshll.u32 %s1020_s21, 8 }
  0x32   : > { %s1321_s29 = scalar_select %p1151_p7, 1, 0 }
  0x33   : > { %s728_s7 = sshll.u32 %s208_s30, 4  ;;  %s1161_s10 = scalar_lea.hbm %s1305_s0, %s742_s6 }
  0x34   : > { %s212_s11 = scalar_lea.vmem [#allocation2], %s728_s7  ;;  %p1165_p11 = pnand %p811_p9, %p38_p12 }
  0x35   : > { %s219_s12 = sshll.u32 %s212_s11, 4  ;;  %s1169_s16 = scalar_lea.sflag [#allocation3], %s208_s30  ;;  %s1163_s12 = int_to_ptr.vmem [resolvable:$true] %s219_s12 }
  0x36   : > { %s924_s23 = scalar_lea.hbm %s1161_s10, 256  ;;  %p926_p0 = pneg %p1165_p11 }
  0x37   : > { %p925_p13 = scmp.ne.s32.totalorder %s1161_s10, %s924_s23  ;;  %s929_s7 = scalar_lea.hbm %s1305_s0, 512 }
  0x38   : > { %p930_p1 = scmp.lt.s32.totalorder %s1161_s10, %s1305_s0  ;;  %p931_p2 = scmp.lt.s32.totalorder %s929_s7, %s924_s23 }
  0x39   : > { %p927_p5 = pnand %p926_p0, %p925_p13 }
  0x3a   : > { %p932_p6 = por %p931_p2, %p930_p1 }
  0x3b   : > { %p928_p10 = pneg %p927_p5 }
  0x3d   : > { %p933_p12 = pnand %p932_p6, %p928_p10 }
  0x3f   : > { %936 = shalt.err (!%p933_p12)
}
  0x40   : > { %s937_s30 = scalar_lea.vmem %s1163_s12, 256  ;;  %s1028_s11 = smov [#allocation2]  }
  0x41   : > { %p938_p3 = scmp.ne.s32.totalorder %s1163_s12, %s937_s30  ;;  %s942_s13 = sshll.u32 %s1028_s11, 4  ;;  %s943_s13 = int_to_ptr.vmem [resolvable:$false] %s942_s13 }
  0x42   : > { %s944_s27 = scalar_lea.vmem %s943_s13, 512  ;;  %p945_p5 = scmp.lt.s32.totalorder %s1163_s12, %s943_s13 }
  0x43   : > { %p940_p9 = pnand %p938_p3, %p926_p0  ;;  %p946_p7 = scmp.lt.s32.totalorder %s944_s27, %s937_s30 }
  0x45   : > { %p941_p13 = pneg %p940_p9  ;;  %p947_p4 = por %p946_p7, %p945_p5 }
  0x47   : > { %p948_p8 = pnand %p947_p4, %p941_p13 }
  0x49   : > { %951 = shalt.err (!%p948_p8)
}
  0x4a   : > { %s1323_s23 = smov 128   ;;  %p1324_p0 = scmp.ne.s32.totalorder %s1318_s26, 0 }
  0x4b   : > { %804 = dma.hbm_to_vmem [thread:$0]  (!%p1165_p11), %s1161_s10, 256, %s1163_s12, %s1169_s16, %s1323_s23, %s1323_s23, %s1027_s14  }
  0x4c   : > { %231 = sbr.rel (%p1324_p0) target bundleno = 585 (0x249), region = 40  ;;  %s1196_s6 = sand.u32 (!%p1324_p0), 1, %s1012_s19  }
  0x4d   : > { %s732_s13 = sshll.u32 (!%p1324_p0), %s1196_s6, 4  ;;  %s234_s7 = scalar_lea.sflag (!%p1324_p0), [#allocation3], %s1196_s6 }
  0x4e   : > { %s1202_s15 = scalar_lea.vmem (!%p1324_p0), [#allocation2], %s732_s13  ;;  %p1325_p4 = scmp.ne.s32.totalorder (!%p1324_p0), %s1316_s24, 0 }
  0x51   : > { %995 = dma.done.wait (%p1325_p4), %s234_s7, 256  }
  0x52   : > { %997 = vsyncadd (%p1325_p4), %s234_s7, 4294967040  ;;  %p1326_p8 = scmp.eq.s32.totalorder %s1084_s22, 0 }
  0x54   : > { %999 = dma.done.wait (%p1326_p8), [#allocation6], 8192   ;;  %p1327_p7 = pmov %p1326_p8 }
  0x55   : > { %v1029_v0 = vmov 0.0   ;;  %v307_v1 = vld [vmem:[#allocation5 + $0xf8] sm:$0xff]  ;;  %v306_v2 = vld [vmem:[#allocation5 + $0xf0] sm:$0xff]  ;;  %v305_v3 = vld [vmem:[#allocation5 + $0xe8] sm:$0xff]  ;;  %s271_s12 = scalar_lea.vmem [#allocation8], %s732_s13  ;;  %s743_s8 = sshll.u32 %s1084_s22, 8 }
  0x56   : > { %1001 = vsyncadd (%p1327_p7), [#allocation6], 4294959104  ;;  %384 = vmatprep.mubr.f32.mxu0 %v1029_v0  ;;  %320 = vmatprep.subr.mxu0 %v307_v1  ;;  %v304_v4 = vld [vmem:[#allocation5 + $0xe0] sm:$0xff]  ;;  %v303_v5 = vld [vmem:[#allocation5 + $0xd8] sm:$0xff]  ;;  %s631_s16 = sshll.u32 %s271_s12, 4  ;;  %s1262_s11 = scalar_lea.hbm %s1310_s5, %s743_s8  ;;  %s1257_s16 = int_to_ptr.vmem [resolvable:$true] %s631_s16 }
  0x57   : > { %321 = vmatpush1.msra.mxu0 %v306_v2  ;;  %v302_v6 = vld [vmem:[#allocation5 + $0xd0] sm:$0xff]  ;;  %v301_v7 = vld [vmem:[#allocation5 + $0xc8] sm:$0xff]  ;;  %v300_v8 = vld [vmem:[#allocation5 + $0xc0] sm:$0xff]  ;;  %s618_s27 = scalar_lea.sflag [#allocation4], %s1196_s6  ;;  %s952_s23 = scalar_lea.vmem %s1257_s16, 256 }
  0x58   : > { %322 = vmatprep.subr.mxu0 %v305_v3  ;;  %v299_v9 = vld [vmem:[#allocation5 + $0xb8] sm:$0xff]  ;;  %v298_v10 = vld [vmem:[#allocation5 + $0xb0] sm:$0xff]  ;;  %v297_v11 = vld [vmem:[#allocation5 + $0xa8] sm:$0xff]  ;;  %v310_v3 = vlaneseq  ;;  %p953_p11 = scmp.ne.s32.totalorder %s1257_s16, %s952_s23  ;;  %p1328_p10 = scmp.ne.s32.totalorder %s1321_s29, 0 }
  0x59   : > { %323 = vmatpush1.msra.mxu0 %v304_v4  ;;  %v296_v12 = vld [vmem:[#allocation5 + $0xa0] sm:$0xff]  ;;  %v295_v13 = vld [vmem:[#allocation5 + $0x98] sm:$0xff]  ;;  %v294_v14 = vld [vmem:[#allocation5 + $0x90] sm:$0xff]  ;;  %s1030_s22 = smov [#allocation8]  }
  0x5a   : > { %324 = vmatprep.subr.mxu0 %v303_v5  ;;  %v293_v15 = vld [vmem:[#allocation5 + $0x88] sm:$0xff]  ;;  %v292_v16 = vld [vmem:[#allocation5 + $0x80] sm:$0xff]  ;;  %v291_v17 = vld [vmem:[#allocation5 + $0x78] sm:$0xff]  ;;  %v311_v4 = vshrl.u32 %v310_v3, 7  ;;  %p954_p1 = pnand %p953_p11, %p1328_p10  ;;  %s956_s13 = sshll.u32 %s1030_s22, 4  ;;  %s957_s13 = int_to_ptr.vmem [resolvable:$false] %s956_s13 }
  0x5b   : > { %325 = vmatpush1.msra.mxu0 %v302_v6  ;;  %v290_v18 = vld [vmem:[#allocation5 + $0x70] sm:$0xff]  ;;  %v289_v19 = vld [vmem:[#allocation5 + $0x68] sm:$0xff]  ;;  %v288_v20 = vld [vmem:[#allocation5 + $0x60] sm:$0xff]  ;;  %s958_s7 = scalar_lea.vmem %s957_s13, 512  ;;  %p959_p6 = scmp.lt.s32.totalorder %s1257_s16, %s957_s13 }
  0x5c   : > { %326 = vmatprep.subr.mxu0 %v301_v7  ;;  %v287_v21 = vld [vmem:[#allocation5 + $0x58] sm:$0xff]  ;;  %v286_v22 = vld [vmem:[#allocation5 + $0x50] sm:$0xff]  ;;  %v285_v23 = vld [vmem:[#allocation5 + $0x48] sm:$0xff]  ;;  %v312_v5 = vsub.s32 0, %v311_v4  ;;  %v316_v7 = vsub.s32 1, %v311_v4  ;;  %p955_p2 = pneg %p954_p1  ;;  %p960_p12 = scmp.lt.s32.totalorder %s958_s7, %s952_s23 }
  0x5d   : > { %327 = vmatpush1.msra.mxu0 %v300_v8  ;;  %v284_v24 = vld [vmem:[#allocation5 + $0x40] sm:$0xff]  ;;  %v283_v25 = vld [vmem:[#allocation5 + $0x38] sm:$0xff]  ;;  %v282_v26 = vld [vmem:[#allocation5 + $0x30] sm:$0xff] }
  0x5e   : > { %328 = vmatprep.subr.mxu0 %v299_v9  ;;  %v281_v27 = vld [vmem:[#allocation5 + $0x28] sm:$0xff]  ;;  %v280_v28 = vld [vmem:[#allocation5 + $0x20] sm:$0xff]  ;;  %v279_v29 = vld [vmem:[#allocation5 + $0x18] sm:$0xff]  ;;  %p961_p3 = por %p960_p12, %p959_p6 }
  0x5f   : > { %329 = vmatpush1.msra.mxu0 %v298_v10  ;;  %v278_v30 = vld [vmem:[#allocation5 + $0x10] sm:$0xff]  ;;  %v277_v31 = vld [vmem:[#allocation5 + $0x8] sm:$0xff]  ;;  %v276_v32 = vld [vmem:[#allocation5] sm:$0xff] }
  0x60   : > { %330 = vmatprep.subr.mxu0 %v297_v11  ;;  %v274_v33 = vld [vmem:[%s1202_s15] sm:$0xff]  ;;  %v275_v34 = vld [vmem:[%s1202_s15 + $0x8] sm:$0xff]  ;;  %p962_p9 = pnand %p961_p3, %p955_p2 }
  0x61   : > { %331 = vmatpush1.msra.mxu0 %v296_v12  ;;  %v532_v35 = vld [vmem:[#allocation7 + $0xf8] sm:$0xff]  ;;  %v531_v37 = vld [vmem:[#allocation7 + $0xf0] sm:$0xff]  ;;  %v530_v39 = vld [vmem:[#allocation7 + $0xe8] sm:$0xff] }
  0x62   : > { %332 = vmatprep.subr.mxu0 %v295_v13  ;;  %v516_v36 = vld [vmem:[#allocation7 + $0x78] sm:$0xff]  ;;  %744 = vmatprep.subr.mxu1 %v532_v35  ;;  %v515_v38 = vld [vmem:[#allocation7 + $0x70] sm:$0xff]  ;;  %v514_v40 = vld [vmem:[#allocation7 + $0x68] sm:$0xff] }
  0x63   : > { %333 = vmatpush1.msra.mxu0 %v294_v14  ;;  %745 = vmatpush3.msra.mxu1 %v516_v36  ;;  %v529_v41 = vld [vmem:[#allocation7 + $0xe0] sm:$0xff]  ;;  %v528_v43 = vld [vmem:[#allocation7 + $0xd8] sm:$0xff]  ;;  %v527_v45 = vld [vmem:[#allocation7 + $0xd0] sm:$0xff] }
  0x64   : > { %334 = vmatprep.subr.mxu0 %v293_v15  ;;  %746 = vmatprep.subr.mxu1 %v531_v37  ;;  %v513_v42 = vld [vmem:[#allocation7 + $0x60] sm:$0xff]  ;;  %v512_v44 = vld [vmem:[#allocation7 + $0x58] sm:$0xff]  ;;  %v511_v46 = vld [vmem:[#allocation7 + $0x50] sm:$0xff] }
  0x65   : > { %335 = vmatpush1.msra.mxu0 %v292_v16  ;;  %747 = vmatpush3.msra.mxu1 %v515_v38  ;;  %v526_v47 = vld [vmem:[#allocation7 + $0xc8] sm:$0xff]  ;;  %v525_v49 = vld [vmem:[#allocation7 + $0xc0] sm:$0xff]  ;;  %v524_v51 = vld [vmem:[#allocation7 + $0xb8] sm:$0xff] }
  0x66   : > { %336 = vmatprep.subr.mxu0 %v291_v17  ;;  %748 = vmatprep.subr.mxu1 %v530_v39  ;;  %v510_v48 = vld [vmem:[#allocation7 + $0x48] sm:$0xff]  ;;  %v509_v50 = vld [vmem:[#allocation7 + $0x40] sm:$0xff]  ;;  %v508_v52 = vld [vmem:[#allocation7 + $0x38] sm:$0xff] }
  0x67   : > { %337 = vmatpush1.msra.mxu0 %v290_v18  ;;  %749 = vmatpush3.msra.mxu1 %v514_v40  ;;  %v523_v53 = vld [vmem:[#allocation7 + $0xb0] sm:$0xff]  ;;  %v522_v55 = vld [vmem:[#allocation7 + $0xa8] sm:$0xff]  ;;  %v521_v57 = vld [vmem:[#allocation7 + $0xa0] sm:$0xff] }
  0x68   : > { %338 = vmatprep.subr.mxu0 %v289_v19  ;;  %750 = vmatprep.subr.mxu1 %v529_v41  ;;  %v507_v54 = vld [vmem:[#allocation7 + $0x30] sm:$0xff]  ;;  %v506_v56 = vld [vmem:[#allocation7 + $0x28] sm:$0xff]  ;;  %v505_v58 = vld [vmem:[#allocation7 + $0x20] sm:$0xff] }
  0x69   : > { %339 = vmatpush1.msra.mxu0 %v288_v20  ;;  %751 = vmatpush3.msra.mxu1 %v513_v42  ;;  %v520_v59 = vld [vmem:[#allocation7 + $0x98] sm:$0xff]  ;;  %v519_v61 = vld [vmem:[#allocation7 + $0x90] sm:$0xff]  ;;  %v518_v63 = vld [vmem:[#allocation7 + $0x88] sm:$0xff] }
  0x6a   : > { %340 = vmatprep.subr.mxu0 %v287_v21  ;;  %752 = vmatprep.subr.mxu1 %v528_v43  ;;  %v504_v60 = vld [vmem:[#allocation7 + $0x18] sm:$0xff]  ;;  %v503_v62 = vld [vmem:[#allocation7 + $0x10] sm:$0xff]  ;;  %v517_v1 = vld [vmem:[#allocation7 + $0x80] sm:$0xff] }
  0x6b   : > { %341 = vmatpush1.msra.mxu0 %v286_v22  ;;  %753 = vmatpush3.msra.mxu1 %v512_v44  ;;  %v501_v2 = vld [vmem:[#allocation7] sm:$0xff] }
  0x6c   : > { %342 = vmatprep.subr.mxu0 %v285_v23  ;;  %754 = vmatprep.subr.mxu1 %v527_v45  ;;  %v308_v6 = vld [vmem:[%s1307_s2] sm:$0x3] }
  0x6d   : > { %343 = vmatpush1.msra.mxu0 %v284_v24  ;;  %755 = vmatpush3.msra.mxu1 %v511_v46  ;;  %v313_v8 = vrot.slane %v308_v6, %v312_v5  ;;  %v317_v9 = vrot.slane %v308_v6, %v316_v7 }
  0x6e   : > { %344 = vmatprep.subr.mxu0 %v283_v25  ;;  %756 = vmatprep.subr.mxu1 %v526_v47 }
  0x6f   : > { %345 = vmatpush1.msra.mxu0 %v282_v26  ;;  %757 = vmatpush3.msra.mxu1 %v510_v48 }
  0x70   : > { %346 = vmatprep.subr.mxu0 %v281_v27  ;;  %758 = vmatprep.subr.mxu1 %v525_v49 }
  0x71   : > { %347 = vmatpush1.msra.mxu0 %v280_v28  ;;  %759 = vmatpush3.msra.mxu1 %v509_v50 }
  0x72   : > { %348 = vmatprep.subr.mxu0 %v279_v29  ;;  %760 = vmatprep.subr.mxu1 %v524_v51 }
  0x73   : > { %349 = vmatpush1.msra.mxu0 %v278_v30  ;;  %761 = vmatpush3.msra.mxu1 %v508_v52 }
  0x74   : > { %350 = vmatprep.subr.mxu0 %v277_v31  ;;  %762 = vmatprep.subr.mxu1 %v523_v53 }
  0x75   : > { %351 = vmatpush1.msra.mxu0 %v276_v32  ;;  %763 = vmatpush3.msra.mxu1 %v507_v54 }
  0x76   : > { %385 = vmatmul.mubr.f32.vlgmr.msra.gmra.mxu0 %v274_v33  ;;  %764 = vmatprep.subr.mxu1 %v522_v55 }
  0x77   : > { %390 = vmatprep.mubr.f32.mxu0 %v1029_v0  ;;  %765 = vmatpush3.msra.mxu1 %v506_v56  ;;  %v502_v0 = vld [vmem:[#allocation7 + $0x8] sm:$0xff] }
  0x78   : > { %766 = vmatprep.subr.mxu1 %v521_v57 }
  0x79   : > { %767 = vmatpush3.msra.mxu1 %v505_v58 }
  0x7a   : > { %391 = vmatmul.mubr.f32.gmra.mxu0 %v275_v34  ;;  %768 = vmatprep.subr.mxu1 %v520_v59 }
  0x7b   : > { %769 = vmatpush3.msra.mxu1 %v504_v60 }
  0x7c   : > { %770 = vmatprep.subr.mxu1 %v519_v61 }
  0x7d   : > { %771 = vmatpush3.msra.mxu1 %v503_v62 }
  0x7e   : > { %772 = vmatprep.subr.mxu1 %v518_v63 }
  0x7f   : > { %773 = vmatpush3.msra.mxu1 %v502_v0 }
  0x80   : > { %774 = vmatprep.subr.mxu1 %v517_v1 }
  0x81   : > { %775 = vmatpush3.msra.mxu1 %v501_v2 }
 0x136   : > { %v386_v10 = vpop.f32.mrf.mxu0 }
 0x137   : > { %v1219_v11 = vadd.f32 %v386_v10, %v313_v8 }
 0x138   : > { %v388_v12 = vpop.f32.mrf.mxu0 }
 0x139   : > { %v1222_v13 = vmul.f32 0.70710677, %v1219_v11  ;;  %v1224_v14 = vadd.f32 %v388_v12, %v317_v9 }
 0x13a   : > { %v392_v15 = vpop.f32.mrf.mxu0 }
 0x13b   : > { %v405_v16 = vand.u32 2147483647, %v1222_v13  ;;  %v1228_v17 = vmul.f32 0.70710677, %v1224_v14  ;;  %v1230_v18 = vadd.f32 %v392_v15, %v313_v8  ;;  %vm481_vm0 = vcmp.lt.f32.partialorder %v1222_v13, 0.0 }
 0x13c   : > { %v394_v19 = vpop.f32.mrf.mxu0  ;;  %v397_v13 = vmul.f32 0.5, %v1219_v11 }
 0x13d   : > { %v409_v20 = vmul.f32 0.3275911, %v405_v16  ;;  %v406_v21 = vand.u32 2147483647, %v1228_v17  ;;  %v1234_v22 = vmul.f32 0.70710677, %v1230_v18  ;;  %v1236_v23 = vadd.f32 %v394_v19, %v317_v9 }
 0x13e   : > { %v457_v34 = vsub.f32 0.0, %v405_v16  ;;  %vm482_vm1 = vcmp.lt.f32.partialorder %v1228_v17, 0.0 }
 0x13f   : > { %v413_v24 = vadd.f32 1.0, %v409_v20  ;;  %v410_v25 = vmul.f32 0.3275911, %v406_v21  ;;  %v407_v26 = vand.u32 2147483647, %v1234_v22  ;;  %v458_v35 = vsub.f32 0.0, %v406_v21 }
 0x140   : > { %v1240_v27 = vmul.f32 0.70710677, %v1236_v23  ;;  %v461_v36 = vmul.f32 %v457_v34, %v405_v16  ;;  %vm483_vm2 = vcmp.lt.f32.partialorder %v1234_v22, 0.0 }
 0x141   : > { %856 = vrcp.f32 %v413_v24  ;;  %v414_v28 = vadd.f32 1.0, %v410_v25  ;;  %v411_v29 = vmul.f32 0.3275911, %v407_v26  ;;  %v459_v37 = vsub.f32 0.0, %v407_v26 }
 0x142   : > { %v408_v30 = vand.u32 2147483647, %v1240_v27  ;;  %v462_v39 = vmul.f32 %v458_v35, %v406_v21  ;;  %v465_v40 = vmul.f32 1.442695, %v461_v36  ;;  %vm484_vm3 = vcmp.lt.f32.partialorder %v1240_v27, 0.0 }
 0x143   : > { %858 = vrcp.f32 %v414_v28  ;;  %v415_v31 = vadd.f32 1.0, %v411_v29  ;;  %v463_v43 = vmul.f32 %v459_v37, %v407_v26  ;;  %v736_v27 = vld [vmem:[%s1309_s4] ss:$0 sm:$0xff] }
 0x144   : > { %v412_v32 = vmul.f32 0.3275911, %v408_v30  ;;  %v460_v41 = vsub.f32 0.0, %v408_v30  ;;  %v467_v46 = vmul.f32 1.442695, %v462_v39 }
 0x145   : > { %860 = vrcp.f32 %v415_v31  ;;  %v469_v51 = vmul.f32 1.442695, %v463_v43 }
 0x146   : > { %v416_v33 = vadd.f32 1.0, %v412_v32  ;;  %v464_v49 = vmul.f32 %v460_v41, %v408_v30 }
 0x148   : > { %862 = vrcp.f32 %v416_v33  ;;  %v471_v58 = vmul.f32 1.442695, %v464_v49 }
 0x149   : > { %864 = vpow2.f32 %v465_v40 }
 0x14a   : > { %866 = vpow2.f32 %v467_v46 }
 0x14b   : > { %868 = vpow2.f32 %v469_v51 }
 0x14c   : > { %870 = vpow2.f32 %v471_v58 }
 0x14e   : > { %v857_v38 = vpop.eup %856 }
 0x14f   : > { %v421_v42 = vmul.f32 1.0614054, %v857_v38 }
 0x150   : > { %v859_v44 = vpop.eup %858 }
 0x151   : > { %v425_v45 = vadd.f32 -1.4531521, %v421_v42  ;;  %v422_v47 = vmul.f32 1.0614054, %v859_v44 }
 0x152   : > { %v861_v48 = vpop.eup %860 }
 0x153   : > { %v429_v50 = vmul.f32 %v857_v38, %v425_v45  ;;  %v426_v52 = vadd.f32 -1.4531521, %v422_v47  ;;  %v423_v53 = vmul.f32 1.0614054, %v861_v48  ;;  %v398_v47 = vmul.f32 0.5, %v1224_v14 }
 0x154   : > { %v399_v14 = vmul.f32 0.5, %v1230_v18 }
 0x155   : > { %v433_v54 = vadd.f32 1.4214138, %v429_v50  ;;  %v863_v55 = vpop.eup %862  ;;  %v430_v56 = vmul.f32 %v859_v44, %v426_v52  ;;  %v427_v57 = vadd.f32 -1.4531521, %v423_v53 }
 0x156   : > { %v424_v60 = vmul.f32 1.0614054, %v863_v55  ;;  %v865_v16 = vpop.eup %864 }
 0x157   : > { %v437_v59 = vmul.f32 %v857_v38, %v433_v54  ;;  %v434_v61 = vadd.f32 1.4214138, %v430_v56  ;;  %v431_v62 = vmul.f32 %v861_v48, %v427_v57  ;;  %v867_v28 = vpop.eup %866 }
 0x158   : > { %v428_v0 = vadd.f32 -1.4531521, %v424_v60  ;;  %v869_v33 = vpop.eup %868 }
 0x159   : > { %v441_v63 = vadd.f32 -0.28449672, %v437_v59  ;;  %v438_v1 = vmul.f32 %v859_v44, %v434_v61  ;;  %v435_v2 = vadd.f32 1.4214138, %v431_v62  ;;  %v871_v40 = vpop.eup %870 }
 0x15a   : > { %v432_v4 = vmul.f32 %v863_v55, %v428_v0 }
 0x15b   : > { %v445_v3 = vmul.f32 %v857_v38, %v441_v63  ;;  %v442_v5 = vadd.f32 -0.28449672, %v438_v1  ;;  %v439_v6 = vmul.f32 %v861_v48, %v435_v2 }
 0x15c   : > { %v436_v8 = vadd.f32 1.4214138, %v432_v4 }
 0x15d   : > { %v449_v7 = vadd.f32 0.2548296, %v445_v3  ;;  %v446_v9 = vmul.f32 %v859_v44, %v442_v5  ;;  %v443_v10 = vadd.f32 -0.28449672, %v439_v6 }
 0x15e   : > { %v440_v15 = vmul.f32 %v863_v55, %v436_v8 }
 0x15f   : > { %v453_v12 = vmul.f32 %v857_v38, %v449_v7  ;;  %v450_v19 = vadd.f32 0.2548296, %v446_v9  ;;  %v447_v20 = vmul.f32 %v861_v48, %v443_v10 }
 0x160   : > { %v444_v24 = vadd.f32 -0.28449672, %v440_v15 }
 0x161   : > { %v473_v21 = vmul.f32 %v865_v16, %v453_v12  ;;  %v454_v25 = vmul.f32 %v859_v44, %v450_v19  ;;  %v451_v26 = vadd.f32 0.2548296, %v447_v20 }
 0x162   : > { %v448_v30 = vmul.f32 %v863_v55, %v444_v24 }
 0x163   : > { %v477_v29 = vsub.f32 1.0, %v473_v21  ;;  %v474_v31 = vmul.f32 %v867_v28, %v454_v25  ;;  %v455_v32 = vmul.f32 %v861_v48, %v451_v26 }
 0x164   : > { %v452_v35 = vadd.f32 0.2548296, %v448_v30 }
 0x165   : > { %v485_v34 = vsub.f32 0.0, %v477_v29  ;;  %v478_v36 = vsub.f32 1.0, %v474_v31  ;;  %v475_v37 = vmul.f32 %v869_v33, %v455_v32 }
 0x166   : > { %v456_v39 = vmul.f32 %v863_v55, %v452_v35  ;;  %v400_v55 = vmul.f32 0.5, %v1236_v23 }
 0x167   : > { %v489_v38 = vsel %vm481_vm0, %v485_v34, %v477_v29  ;;  %v486_v41 = vsub.f32 0.0, %v478_v36  ;;  %v479_v42 = vsub.f32 1.0, %v475_v37 }
 0x168   : > { %v476_v43 = vmul.f32 %v871_v40, %v456_v39  ;;  %v493_v45 = vadd.f32 1.0, %v489_v38 }
 0x169   : > { %v490_v44 = vsel %vm482_vm1, %v486_v41, %v478_v36  ;;  %v487_v46 = vsub.f32 0.0, %v479_v42 }
 0x16a   : > { %v494_v48 = vadd.f32 1.0, %v490_v44  ;;  %v480_v49 = vsub.f32 1.0, %v476_v43  ;;  %v497_v53 = vmul.f32 %v493_v45, %v397_v13 }
 0x16b   : > { %v491_v50 = vsel %vm483_vm2, %v487_v46, %v479_v42 }
 0x16c   : > { %v498_v51 = vmul.f32 %v494_v48, %v398_v47  ;;  %v488_v52 = vsub.f32 0.0, %v480_v49  ;;  %v495_v54 = vadd.f32 1.0, %v491_v50 }
 0x16e   : > { %604 = vmatprep.mubr.f32.mxu1 %v498_v51  ;;  %v492_v17 = vsel %vm484_vm3, %v488_v52, %v480_v49  ;;  %v499_v57 = vmul.f32 %v495_v54, %v399_v14 }
 0x16f   : > { %605 = vmatmul.mubr.f32.vlgmr.msra.gmra.mxu1 %v497_v53  ;;  %v496_v22 = vadd.f32 1.0, %v492_v17 }
 0x171   : > { %v500_v56 = vmul.f32 %v496_v22, %v400_v55 }
 0x173   : > { %609 = vmatprep.mubr.f32.mxu1 %v500_v56 }
 0x174   : > { %610 = vmatmul.mubr.f32.gmra.mxu1 %v499_v57 }
 0x22f   : > { %v776_v11 = vpop.f32.mrf.mxu1 }
 0x231   : > { %v777_v58 = vpop.f32.mrf.mxu1 }
 0x232   : > { %v778_v59 = vadd.f32 %v777_v58, %v776_v11 }
 0x234   : > { %v607_v60 = vadd.f32 %v778_v59, %v736_v27  ;;  %v779_v23 = vpop.f32.mrf.mxu1 }
 0x236   : > { %615 = vst [vmem:[%s271_s12] sm:$0xff] %v607_v60  ;;  %v780_v18 = vpop.f32.mrf.mxu1 }
 0x237   : > { %v781_v61 = vadd.f32 %v780_v18, %v779_v23 }
 0x239   : > { %v612_v62 = vadd.f32 %v781_v61, %v736_v27 }
 0x23b   : > { %616 = vst [vmem:[%s271_s12 + $0x8] sm:$0xff] %v612_v62 }
 0x23c   : > { %965 = shalt.err (!%p962_p9)
}
 0x23d   : > { %s966_s15 = scalar_lea.hbm %s1262_s11, 256  ;;  %s970_s14 = scalar_lea.hbm %s1310_s5, 512 }
 0x23e   : > { %p967_p13 = scmp.ne.s32.totalorder %s1262_s11, %s966_s15  ;;  %p971_p4 = scmp.lt.s32.totalorder %s1262_s11, %s1310_s5 }
 0x23f   : > { %p972_p8 = scmp.lt.s32.totalorder %s970_s14, %s966_s15 }
 0x240   : > { %p968_p5 = pnand %p967_p13, %p1328_p10 }
 0x241   : > { %p973_p7 = por %p972_p8, %p971_p4 }
 0x242   : > { %p969_p0 = pneg %p968_p5 }
 0x244   : > { %p974_p11 = pnand %p973_p7, %p969_p0 }
 0x246   : > { %977 = shalt.err (!%p974_p11)
}
 0x247   : > { %s1031_s8 = smov 128   ;;  %s1032_s9 = smov 8  }
 0x248   : > { %792 = dma.vmem_to_hbm [thread:$0]  (%p1328_p10), %s1257_s16, 256, %s1262_s11, %s618_s27, %s1031_s8, %s1031_s8, %s1032_s9  }
 0x249 PF: > { %s646_s30 = sand.u32 1, %s1008_s18   ;;  %p1329_p1 = scmp.ne.s32.totalorder %s1317_s25, 0 }
 0x24a   : > { %p1330_p2 = scmp.ge.s32.totalorder %s1020_s21, 2  ;;  %s647_s23 = scalar_lea.sflag [#allocation4], %s646_s30 }
 0x24c   : > { %p806_p6 = pnand %p1330_p2, %p1329_p1 }
 0x24e   : > { %p807_p12 = pneg %p806_p6 }
 0x250   : > { %1003 = dma.done.wait (%p807_p12), %s647_s23, 256  }
 0x251   : > { %1005 = vsyncadd (%p807_p12), %s647_s23, 4294967040  ;;  %p19_p3 = scmp.ge.s32.totalorder %s1138_s17, 4   ;;  %s1331_s18 = smov %s1012_s19 }
 0x252   : > { %s1332_s19 = smov %s1016_s20  ;;  %s1333_s20 = smov %s1147_s28 }
 0x253   : > { %s1334_s21 = smov %s1138_s17  ;;  %21 = sbr.rel (!%p19_p3) target bundleno = 6 (0x6), region = 93 }
 0x258   :  { %652 = vsyncpa [#allocation3], 1 }
 0x259   :  { %654 = vsyncpa [#allocation3 + $0x1], 1 }
 0x25a   :  { %655 = vsyncpa [#allocation6], 1 }
 0x25b   :  { %656 = vsyncpa [#allocation4], 1 }
 0x25c   :  { %658 = vsyncpa [#allocation4 + $0x1], 1 }

</bundles_post_ra>
